<compile_context>
chip_gen: v6e
topology: v6e:2x2x1
jax: 0.10.0
libtpu: 0.0.40
codegen_flags: <defaults>
</compile_context>

<pallas_src>
import numpy as np
import jax
import jax.numpy as jnp
from jax import lax
from jax.experimental import pallas as pl
from jax.experimental.pallas import tpu as pltpu


# ----------------------------- Pallas kernel ------------------------------ #

def oracle_kernel(raw2d_ref, ind_ref,
                  wih_ref, whh_ref,            # fused GRU weights (F_rnn,3H),(H,3H)
                  bi_ref, bhn_ref,             # fused biases (1,3H), (1,H)
                  wind_ref, bind_ref,          # lin_ind  (F_ind, D), (1, D)
                  wdz_ref, wdh_ref, bd_ref,    # lin_des split: (D,des),(H,des),(1,des)
                  wp_ref, bp_ref,              # lin_pos (des, 1), (1, 1)
                  out_ref):                    # (Bp, 1)
    Bp = ind_ref.shape[0]
    T = raw2d_ref.shape[0] // Bp
    H = whh_ref.shape[0]

    whh = whh_ref[...]                         # (H, 3H) fused hidden gate weights
    bhn = bhn_ref[...]                         # (1, H)

    # Hoisted x-side gate projections for ALL timesteps in one MXU matmul.
    # Column order of the 3H axis is [r | z | n]; b_ir+b_hr, b_iz+b_hz and
    # b_in are already folded into bi_ref.
    gi = (jnp.dot(raw2d_ref[...], wih_ref[...],
                  preferred_element_type=jnp.float32) + bi_ref[...])   # (T*Bp, 3H)

    h = jnp.zeros((Bp, H), jnp.float32)
    # Statically unrolled recurrence (T is small and fixed at trace time).
    for t in range(T):
        gi_t = gi[t * Bp:(t + 1) * Bp, :]                              # (Bp, 3H)
        gh = jnp.dot(h, whh, preferred_element_type=jnp.float32)       # (Bp, 3H)
        r = jax.nn.sigmoid(gi_t[:, :H] + gh[:, :H])
        z = jax.nn.sigmoid(gi_t[:, H:2 * H] + gh[:, H:2 * H])
        n = jnp.tanh(gi_t[:, 2 * H:] + r * (gh[:, 2 * H:] + bhn))
        h = (1.0 - z) * n + z * h

    # z = relu(lin_ind(indicators))
    z_ind = jnp.maximum(
        jnp.dot(ind_ref[...], wind_ref[...], preferred_element_type=jnp.float32)
        + bind_ref[...], 0.0)

    # x = relu(lin_des(cat([z, h], dim=1)))  -- concat realized as split matmul
    x = jnp.maximum(
        jnp.dot(z_ind, wdz_ref[...], preferred_element_type=jnp.float32)
        + jnp.dot(h, wdh_ref[...], preferred_element_type=jnp.float32)
        + bd_ref[...], 0.0)

    # p = tanh(lin_pos(x))
    p = jnp.tanh(
        jnp.dot(x, wp_ref[...], preferred_element_type=jnp.float32) + bp_ref[...])

    out_ref[...] = p.astype(out_ref.dtype)


# ------------------------------- Wrapper ----------------------------------- #

def init_oracle_params(key, rnn_input_size, ind_input_size,
                       rnn_hidden_size=16, ind_hidden_size=4, des_size=4):
    """Deterministic PyTorch-style uniform init of all Oracle parameters."""
    ks = jax.random.split(key, 12)

    def u(k, shape, fan):
        bound = 1.0 / np.sqrt(fan)
        return jax.random.uniform(k, shape, jnp.float32, -bound, bound)

    H, I, J, D = rnn_hidden_size, rnn_input_size, ind_input_size, ind_hidden_size
    params = {
        # GRU: weight_ih (3H, I), weight_hh (3H, H), biases (3H,) — gate order [r, z, n]
        "w_ih": u(ks[0], (3 * H, I), H),
        "w_hh": u(ks[1], (3 * H, H), H),
        "b_ih": u(ks[2], (3 * H,), H),
        "b_hh": u(ks[3], (3 * H,), H),
        # lin_ind: (D, J)
        "w_ind": u(ks[4], (D, J), J),
        "b_ind": u(ks[5], (D,), J),
        # lin_des: (des, H + D)
        "w_des": u(ks[6], (des_size, H + D), H + D),
        "b_des": u(ks[7], (des_size,), H + D),
        # lin_pos: (1, des)
        "w_pos": u(ks[8], (1, des_size), des_size),
        "b_pos": u(ks[9], (1,), des_size),
    }
    return params


def oracle_forward(raw, indicators, params,
                   rnn_hidden_size=16, ind_hidden_size=4):
    B, T, F = raw.shape
    H, D = rnn_hidden_size, ind_hidden_size

    # Pad batch to a multiple of 8 so (B, ·) tiles fill f32 sublanes.
    Bp = ((B + 7) // 8) * 8
    raw_f = raw.astype(jnp.float32)
    ind = indicators.astype(jnp.float32)
    if Bp != B:
        raw_f = jnp.pad(raw_f, ((0, Bp - B), (0, 0), (0, 0)))
        ind = jnp.pad(ind, ((0, Bp - B), (0, 0)))

    # time-major then flatten (T, Bp, F) -> (T*Bp, F): the per-timestep input
    # projections become a single batched matmul inside the kernel.
    raw2d = jnp.transpose(raw_f, (1, 0, 2)).reshape(T * Bp, F)

    w_ih, w_hh = params["w_ih"], params["w_hh"]
    b_ih, b_hh = params["b_ih"], params["b_hh"]

    # Fused gate weights (column order [r | z | n]) pre-transposed for x @ W_T.
    w_i_cat = w_ih.T                               # (F, 3H)
    w_h_cat = w_hh.T                               # (H, 3H)
    # Pre-summed r/z biases + b_in, all folded into the hoisted gi precompute.
    b_i_all = jnp.concatenate([
        b_ih[:H] + b_hh[:H],
        b_ih[H:2 * H] + b_hh[H:2 * H],
        b_ih[2 * H:],
    ]).reshape(1, 3 * H)
    b_hn = b_hh[2 * H:].reshape(1, H)              # stays separate (scaled by r)

    wind = params["w_ind"].T                       # (J, D)
    bind = params["b_ind"].reshape(1, D)
    wdz = params["w_des"][:, :D].T                 # (D, des)   columns for z
    wdh = params["w_des"][:, D:].T                 # (H, des)   columns for h
    bd = params["b_des"].reshape(1, -1)
    wp = params["w_pos"].T                         # (des, 1)
    bp = params["b_pos"].reshape(1, 1)

    inputs = (raw2d, ind,
              w_i_cat, w_h_cat, b_i_all, b_hn,
              wind, bind, wdz, wdh, bd, wp, bp)

    vmem = pl.BlockSpec(memory_space=pltpu.MemorySpace.VMEM)
    out = pl.pallas_call(
        oracle_kernel,
        out_shape=jax.ShapeDtypeStruct((Bp, 1), jnp.float32),
        in_specs=[vmem] * len(inputs),
        out_specs=vmem,
    )(*inputs)
    return out[:B, 0]


# --------------------------- Pure-JAX reference ---------------------------- #

def oracle_reference(raw, indicators, params, rnn_hidden_size=16, ind_hidden_size=4):
    B, T, _ = raw.shape
    H, D = rnn_hidden_size, ind_hidden_size
    w_ih, w_hh, b_ih, b_hh = params["w_ih"], params["w_hh"], params["b_ih"], params["b_hh"]

    def step(h, x_t):
        gi = x_t @ w_ih.T + b_ih
        gh = h @ w_hh.T + b_hh
        r = jax.nn.sigmoid(gi[:, :H] + gh[:, :H])
        z = jax.nn.sigmoid(gi[:, H:2 * H] + gh[:, H:2 * H])
        n = jnp.tanh(gi[:, 2 * H:] + r * gh[:, 2 * H:])
        return (1.0 - z) * n + z * h, None

    h, _ = lax.scan(step, jnp.zeros((B, H), jnp.float32),
                    jnp.transpose(raw, (1, 0, 2)).astype(jnp.float32))
    z = jax.nn.relu(indicators @ params["w_ind"].T + params["b_ind"])
    x = jnp.concatenate([z, h], axis=1)
    x = jax.nn.relu(x @ params["w_des"].T + params["b_des"])
    p = jnp.tanh(x @ params["w_pos"].T + params["b_pos"])
    return p.reshape(-1)


# --------------------------------- Main ------------------------------------ #

if __name__ == "__main__":
    B, T = 4, 8                    # batch, sequence length
    RNN_IN, IND_IN = 6, 5          # raw feature dim, indicator feature dim
    H, D, DES = 16, 4, 4           # rnn_hidden_size, ind_hidden_size, des_size

    key = jax.random.PRNGKey(0)
    k_raw, k_ind, k_par = jax.random.split(key, 3)

    raw = jax.random.normal(k_raw, (B, T, RNN_IN), jnp.float32)
    indicators = jax.random.normal(k_ind, (B, IND_IN), jnp.float32)
    params = init_oracle_params(k_par, RNN_IN, IND_IN, H, D, DES)

    out = oracle_forward(raw, indicators, params, H, D)
    out = jax.block_until_ready(out)

    ref = oracle_reference(raw, indicators, params, H, D)
    np.testing.assert_allclose(np.asarray(out), np.asarray(ref), rtol=1e-5, atol=1e-5)

    print("KERNEL_OK")
</pallas_src>

<mosaic_0001>
module attributes {stable_mosaic.version = 11 : i64} {
  func.func @oracle_kernel(%arg0: memref<64x6xf32, #tpu.memory_space<vmem>>, %arg1: memref<8x5xf32, #tpu.memory_space<vmem>>, %arg2: memref<6x48xf32, #tpu.memory_space<vmem>>, %arg3: memref<16x48xf32, #tpu.memory_space<vmem>>, %arg4: memref<1x48xf32, #tpu.memory_space<vmem>>, %arg5: memref<1x16xf32, #tpu.memory_space<vmem>>, %arg6: memref<5x4xf32, #tpu.memory_space<vmem>>, %arg7: memref<1x4xf32, #tpu.memory_space<vmem>>, %arg8: memref<4x4xf32, #tpu.memory_space<vmem>>, %arg9: memref<16x4xf32, #tpu.memory_space<vmem>>, %arg10: memref<1x4xf32, #tpu.memory_space<vmem>>, %arg11: memref<4x1xf32, #tpu.memory_space<vmem>>, %arg12: memref<1x1xf32, #tpu.memory_space<vmem>>, %arg13: memref<8x1xf32, #tpu.memory_space<vmem>>) attributes {dimension_semantics = [], scalar_prefetch = 0 : i64, scratch_operands = 0 : i64, tpu.core_type = #tpu.core_type<tc>} {
    %c0 = arith.constant 0 : index
    %c0_0 = arith.constant 0 : index
    %0 = vector.load %arg3[%c0, %c0_0] : memref<16x48xf32, #tpu.memory_space<vmem>>, vector<16x48xf32>
    %c0_1 = arith.constant 0 : index
    %c0_2 = arith.constant 0 : index
    %1 = vector.load %arg5[%c0_1, %c0_2] : memref<1x16xf32, #tpu.memory_space<vmem>>, vector<1x16xf32>
    %c0_3 = arith.constant 0 : index
    %c0_4 = arith.constant 0 : index
    %2 = vector.load %arg0[%c0_3, %c0_4] : memref<64x6xf32, #tpu.memory_space<vmem>>, vector<64x6xf32>
    %c0_5 = arith.constant 0 : index
    %c0_6 = arith.constant 0 : index
    %3 = vector.load %arg2[%c0_5, %c0_6] : memref<6x48xf32, #tpu.memory_space<vmem>>, vector<6x48xf32>
    %cst = arith.constant dense<0.000000e+00> : vector<64x48xf32>
    %4 = tpu.matmul %2, %3, %cst {dimension_numbers = #tpu.dot_dimension_numbers<[1], [0], [0], [1], [0, 0, 1, 1], [], []>} : vector<64x6xf32>, vector<6x48xf32>, vector<64x48xf32> -> vector<64x48xf32>
    %c0_7 = arith.constant 0 : index
    %c0_8 = arith.constant 0 : index
    %5 = vector.load %arg4[%c0_7, %c0_8] : memref<1x48xf32, #tpu.memory_space<vmem>>, vector<1x48xf32>
    %6 = vector.broadcast %5 : vector<1x48xf32> to vector<64x48xf32>
    %7 = arith.addf %4, %6 : vector<64x48xf32>
    %cst_9 = arith.constant 0.000000e+00 : f32
    %8 = vector.broadcast %cst_9 : f32 to vector<8x16xf32>
    %9 = vector.extract_strided_slice %7 {offsets = [0, 0], sizes = [8, 48], strides = [1, 1]} : vector<64x48xf32> to vector<8x48xf32>
    %cst_10 = arith.constant dense<0.000000e+00> : vector<8x48xf32>
    %10 = tpu.matmul %8, %0, %cst_10 {dimension_numbers = #tpu.dot_dimension_numbers<[1], [0], [0], [1], [0, 0, 1, 1], [], []>} : vector<8x16xf32>, vector<16x48xf32>, vector<8x48xf32> -> vector<8x48xf32>
    %11 = vector.extract_strided_slice %9 {offsets = [0, 0], sizes = [8, 16], strides = [1, 1]} : vector<8x48xf32> to vector<8x16xf32>
    %12 = vector.extract_strided_slice %10 {offsets = [0, 0], sizes = [8, 16], strides = [1, 1]} : vector<8x48xf32> to vector<8x16xf32>
    %13 = arith.addf %11, %12 : vector<8x16xf32>
    %14 = arith.negf %13 : vector<8x16xf32>
    %15 = math.exp %14 : vector<8x16xf32>
    %cst_11 = arith.constant 1.000000e+00 : f32
    %16 = vector.broadcast %cst_11 : f32 to vector<8x16xf32>
    %17 = arith.addf %16, %15 : vector<8x16xf32>
    %18 = arith.divf %16, %17 : vector<8x16xf32>
    %19 = vector.extract_strided_slice %9 {offsets = [0, 16], sizes = [8, 16], strides = [1, 1]} : vector<8x48xf32> to vector<8x16xf32>
    %20 = vector.extract_strided_slice %10 {offsets = [0, 16], sizes = [8, 16], strides = [1, 1]} : vector<8x48xf32> to vector<8x16xf32>
    %21 = arith.addf %19, %20 : vector<8x16xf32>
    %22 = arith.negf %21 : vector<8x16xf32>
    %23 = math.exp %22 : vector<8x16xf32>
    %cst_12 = arith.constant 1.000000e+00 : f32
    %24 = vector.broadcast %cst_12 : f32 to vector<8x16xf32>
    %25 = arith.addf %24, %23 : vector<8x16xf32>
    %26 = arith.divf %24, %25 : vector<8x16xf32>
    %27 = vector.extract_strided_slice %9 {offsets = [0, 32], sizes = [8, 16], strides = [1, 1]} : vector<8x48xf32> to vector<8x16xf32>
    %28 = vector.extract_strided_slice %10 {offsets = [0, 32], sizes = [8, 16], strides = [1, 1]} : vector<8x48xf32> to vector<8x16xf32>
    %29 = vector.broadcast %1 : vector<1x16xf32> to vector<8x16xf32>
    %30 = arith.addf %28, %29 : vector<8x16xf32>
    %31 = arith.mulf %18, %30 : vector<8x16xf32>
    %32 = arith.addf %27, %31 : vector<8x16xf32>
    %33 = math.tanh %32 : vector<8x16xf32>
    %cst_13 = arith.constant 1.000000e+00 : f32
    %34 = vector.broadcast %cst_13 : f32 to vector<8x16xf32>
    %35 = arith.subf %34, %26 : vector<8x16xf32>
    %36 = arith.mulf %35, %33 : vector<8x16xf32>
    %37 = arith.mulf %26, %8 : vector<8x16xf32>
    %38 = arith.addf %36, %37 : vector<8x16xf32>
    %39 = vector.extract_strided_slice %7 {offsets = [8, 0], sizes = [8, 48], strides = [1, 1]} : vector<64x48xf32> to vector<8x48xf32>
    %cst_14 = arith.constant dense<0.000000e+00> : vector<8x48xf32>
    %40 = tpu.matmul %38, %0, %cst_14 {dimension_numbers = #tpu.dot_dimension_numbers<[1], [0], [0], [1], [0, 0, 1, 1], [], []>} : vector<8x16xf32>, vector<16x48xf32>, vector<8x48xf32> -> vector<8x48xf32>
    %41 = vector.extract_strided_slice %39 {offsets = [0, 0], sizes = [8, 16], strides = [1, 1]} : vector<8x48xf32> to vector<8x16xf32>
    %42 = vector.extract_strided_slice %40 {offsets = [0, 0], sizes = [8, 16], strides = [1, 1]} : vector<8x48xf32> to vector<8x16xf32>
    %43 = arith.addf %41, %42 : vector<8x16xf32>
    %44 = arith.negf %43 : vector<8x16xf32>
    %45 = math.exp %44 : vector<8x16xf32>
    %cst_15 = arith.constant 1.000000e+00 : f32
    %46 = vector.broadcast %cst_15 : f32 to vector<8x16xf32>
    %47 = arith.addf %46, %45 : vector<8x16xf32>
    %48 = arith.divf %46, %47 : vector<8x16xf32>
    %49 = vector.extract_strided_slice %39 {offsets = [0, 16], sizes = [8, 16], strides = [1, 1]} : vector<8x48xf32> to vector<8x16xf32>
    %50 = vector.extract_strided_slice %40 {offsets = [0, 16], sizes = [8, 16], strides = [1, 1]} : vector<8x48xf32> to vector<8x16xf32>
    %51 = arith.addf %49, %50 : vector<8x16xf32>
    %52 = arith.negf %51 : vector<8x16xf32>
    %53 = math.exp %52 : vector<8x16xf32>
    %cst_16 = arith.constant 1.000000e+00 : f32
    %54 = vector.broadcast %cst_16 : f32 to vector<8x16xf32>
    %55 = arith.addf %54, %53 : vector<8x16xf32>
    %56 = arith.divf %54, %55 : vector<8x16xf32>
    %57 = vector.extract_strided_slice %39 {offsets = [0, 32], sizes = [8, 16], strides = [1, 1]} : vector<8x48xf32> to vector<8x16xf32>
    %58 = vector.extract_strided_slice %40 {offsets = [0, 32], sizes = [8, 16], strides = [1, 1]} : vector<8x48xf32> to vector<8x16xf32>
    %59 = vector.broadcast %1 : vector<1x16xf32> to vector<8x16xf32>
    %60 = arith.addf %58, %59 : vector<8x16xf32>
    %61 = arith.mulf %48, %60 : vector<8x16xf32>
    %62 = arith.addf %57, %61 : vector<8x16xf32>
    %63 = math.tanh %62 : vector<8x16xf32>
    %cst_17 = arith.constant 1.000000e+00 : f32
    %64 = vector.broadcast %cst_17 : f32 to vector<8x16xf32>
    %65 = arith.subf %64, %56 : vector<8x16xf32>
    %66 = arith.mulf %65, %63 : vector<8x16xf32>
    %67 = arith.mulf %56, %38 : vector<8x16xf32>
    %68 = arith.addf %66, %67 : vector<8x16xf32>
    %69 = vector.extract_strided_slice %7 {offsets = [16, 0], sizes = [8, 48], strides = [1, 1]} : vector<64x48xf32> to vector<8x48xf32>
    %cst_18 = arith.constant dense<0.000000e+00> : vector<8x48xf32>
    %70 = tpu.matmul %68, %0, %cst_18 {dimension_numbers = #tpu.dot_dimension_numbers<[1], [0], [0], [1], [0, 0, 1, 1], [], []>} : vector<8x16xf32>, vector<16x48xf32>, vector<8x48xf32> -> vector<8x48xf32>
    %71 = vector.extract_strided_slice %69 {offsets = [0, 0], sizes = [8, 16], strides = [1, 1]} : vector<8x48xf32> to vector<8x16xf32>
    %72 = vector.extract_strided_slice %70 {offsets = [0, 0], sizes = [8, 16], strides = [1, 1]} : vector<8x48xf32> to vector<8x16xf32>
    %73 = arith.addf %71, %72 : vector<8x16xf32>
    %74 = arith.negf %73 : vector<8x16xf32>
    %75 = math.exp %74 : vector<8x16xf32>
    %cst_19 = arith.constant 1.000000e+00 : f32
    %76 = vector.broadcast %cst_19 : f32 to vector<8x16xf32>
    %77 = arith.addf %76, %75 : vector<8x16xf32>
    %78 = arith.divf %76, %77 : vector<8x16xf32>
    %79 = vector.extract_strided_slice %69 {offsets = [0, 16], sizes = [8, 16], strides = [1, 1]} : vector<8x48xf32> to vector<8x16xf32>
    %80 = vector.extract_strided_slice %70 {offsets = [0, 16], sizes = [8, 16], strides = [1, 1]} : vector<8x48xf32> to vector<8x16xf32>
    %81 = arith.addf %79, %80 : vector<8x16xf32>
    %82 = arith.negf %81 : vector<8x16xf32>
    %83 = math.exp %82 : vector<8x16xf32>
    %cst_20 = arith.constant 1.000000e+00 : f32
    %84 = vector.broadcast %cst_20 : f32 to vector<8x16xf32>
    %85 = arith.addf %84, %83 : vector<8x16xf32>
    %86 = arith.divf %84, %85 : vector<8x16xf32>
    %87 = vector.extract_strided_slice %69 {offsets = [0, 32], sizes = [8, 16], strides = [1, 1]} : vector<8x48xf32> to vector<8x16xf32>
    %88 = vector.extract_strided_slice %70 {offsets = [0, 32], sizes = [8, 16], strides = [1, 1]} : vector<8x48xf32> to vector<8x16xf32>
    %89 = vector.broadcast %1 : vector<1x16xf32> to vector<8x16xf32>
    %90 = arith.addf %88, %89 : vector<8x16xf32>
    %91 = arith.mulf %78, %90 : vector<8x16xf32>
    %92 = arith.addf %87, %91 : vector<8x16xf32>
    %93 = math.tanh %92 : vector<8x16xf32>
    %cst_21 = arith.constant 1.000000e+00 : f32
    %94 = vector.broadcast %cst_21 : f32 to vector<8x16xf32>
    %95 = arith.subf %94, %86 : vector<8x16xf32>
    %96 = arith.mulf %95, %93 : vector<8x16xf32>
    %97 = arith.mulf %86, %68 : vector<8x16xf32>
    %98 = arith.addf %96, %97 : vector<8x16xf32>
    %99 = vector.extract_strided_slice %7 {offsets = [24, 0], sizes = [8, 48], strides = [1, 1]} : vector<64x48xf32> to vector<8x48xf32>
    %cst_22 = arith.constant dense<0.000000e+00> : vector<8x48xf32>
    %100 = tpu.matmul %98, %0, %cst_22 {dimension_numbers = #tpu.dot_dimension_numbers<[1], [0], [0], [1], [0, 0, 1, 1], [], []>} : vector<8x16xf32>, vector<16x48xf32>, vector<8x48xf32> -> vector<8x48xf32>
    %101 = vector.extract_strided_slice %99 {offsets = [0, 0], sizes = [8, 16], strides = [1, 1]} : vector<8x48xf32> to vector<8x16xf32>
    %102 = vector.extract_strided_slice %100 {offsets = [0, 0], sizes = [8, 16], strides = [1, 1]} : vector<8x48xf32> to vector<8x16xf32>
    %103 = arith.addf %101, %102 : vector<8x16xf32>
    %104 = arith.negf %103 : vector<8x16xf32>
    %105 = math.exp %104 : vector<8x16xf32>
    %cst_23 = arith.constant 1.000000e+00 : f32
    %106 = vector.broadcast %cst_23 : f32 to vector<8x16xf32>
    %107 = arith.addf %106, %105 : vector<8x16xf32>
    %108 = arith.divf %106, %107 : vector<8x16xf32>
    %109 = vector.extract_strided_slice %99 {offsets = [0, 16], sizes = [8, 16], strides = [1, 1]} : vector<8x48xf32> to vector<8x16xf32>
    %110 = vector.extract_strided_slice %100 {offsets = [0, 16], sizes = [8, 16], strides = [1, 1]} : vector<8x48xf32> to vector<8x16xf32>
    %111 = arith.addf %109, %110 : vector<8x16xf32>
    %112 = arith.negf %111 : vector<8x16xf32>
    %113 = math.exp %112 : vector<8x16xf32>
    %cst_24 = arith.constant 1.000000e+00 : f32
    %114 = vector.broadcast %cst_24 : f32 to vector<8x16xf32>
    %115 = arith.addf %114, %113 : vector<8x16xf32>
    %116 = arith.divf %114, %115 : vector<8x16xf32>
    %117 = vector.extract_strided_slice %99 {offsets = [0, 32], sizes = [8, 16], strides = [1, 1]} : vector<8x48xf32> to vector<8x16xf32>
    %118 = vector.extract_strided_slice %100 {offsets = [0, 32], sizes = [8, 16], strides = [1, 1]} : vector<8x48xf32> to vector<8x16xf32>
    %119 = vector.broadcast %1 : vector<1x16xf32> to vector<8x16xf32>
    %120 = arith.addf %118, %119 : vector<8x16xf32>
    %121 = arith.mulf %108, %120 : vector<8x16xf32>
    %122 = arith.addf %117, %121 : vector<8x16xf32>
    %123 = math.tanh %122 : vector<8x16xf32>
    %cst_25 = arith.constant 1.000000e+00 : f32
    %124 = vector.broadcast %cst_25 : f32 to vector<8x16xf32>
    %125 = arith.subf %124, %116 : vector<8x16xf32>
    %126 = arith.mulf %125, %123 : vector<8x16xf32>
    %127 = arith.mulf %116, %98 : vector<8x16xf32>
    %128 = arith.addf %126, %127 : vector<8x16xf32>
    %129 = vector.extract_strided_slice %7 {offsets = [32, 0], sizes = [8, 48], strides = [1, 1]} : vector<64x48xf32> to vector<8x48xf32>
    %cst_26 = arith.constant dense<0.000000e+00> : vector<8x48xf32>
    %130 = tpu.matmul %128, %0, %cst_26 {dimension_numbers = #tpu.dot_dimension_numbers<[1], [0], [0], [1], [0, 0, 1, 1], [], []>} : vector<8x16xf32>, vector<16x48xf32>, vector<8x48xf32> -> vector<8x48xf32>
    %131 = vector.extract_strided_slice %129 {offsets = [0, 0], sizes = [8, 16], strides = [1, 1]} : vector<8x48xf32> to vector<8x16xf32>
    %132 = vector.extract_strided_slice %130 {offsets = [0, 0], sizes = [8, 16], strides = [1, 1]} : vector<8x48xf32> to vector<8x16xf32>
    %133 = arith.addf %131, %132 : vector<8x16xf32>
    %134 = arith.negf %133 : vector<8x16xf32>
    %135 = math.exp %134 : vector<8x16xf32>
    %cst_27 = arith.constant 1.000000e+00 : f32
    %136 = vector.broadcast %cst_27 : f32 to vector<8x16xf32>
    %137 = arith.addf %136, %135 : vector<8x16xf32>
    %138 = arith.divf %136, %137 : vector<8x16xf32>
    %139 = vector.extract_strided_slice %129 {offsets = [0, 16], sizes = [8, 16], strides = [1, 1]} : vector<8x48xf32> to vector<8x16xf32>
    %140 = vector.extract_strided_slice %130 {offsets = [0, 16], sizes = [8, 16], strides = [1, 1]} : vector<8x48xf32> to vector<8x16xf32>
    %141 = arith.addf %139, %140 : vector<8x16xf32>
    %142 = arith.negf %141 : vector<8x16xf32>
    %143 = math.exp %142 : vector<8x16xf32>
    %cst_28 = arith.constant 1.000000e+00 : f32
    %144 = vector.broadcast %cst_28 : f32 to vector<8x16xf32>
    %145 = arith.addf %144, %143 : vector<8x16xf32>
    %146 = arith.divf %144, %145 : vector<8x16xf32>
    %147 = vector.extract_strided_slice %129 {offsets = [0, 32], sizes = [8, 16], strides = [1, 1]} : vector<8x48xf32> to vector<8x16xf32>
    %148 = vector.extract_strided_slice %130 {offsets = [0, 32], sizes = [8, 16], strides = [1, 1]} : vector<8x48xf32> to vector<8x16xf32>
    %149 = vector.broadcast %1 : vector<1x16xf32> to vector<8x16xf32>
    %150 = arith.addf %148, %149 : vector<8x16xf32>
    %151 = arith.mulf %138, %150 : vector<8x16xf32>
    %152 = arith.addf %147, %151 : vector<8x16xf32>
    %153 = math.tanh %152 : vector<8x16xf32>
    %cst_29 = arith.constant 1.000000e+00 : f32
    %154 = vector.broadcast %cst_29 : f32 to vector<8x16xf32>
    %155 = arith.subf %154, %146 : vector<8x16xf32>
    %156 = arith.mulf %155, %153 : vector<8x16xf32>
    %157 = arith.mulf %146, %128 : vector<8x16xf32>
    %158 = arith.addf %156, %157 : vector<8x16xf32>
    %159 = vector.extract_strided_slice %7 {offsets = [40, 0], sizes = [8, 48], strides = [1, 1]} : vector<64x48xf32> to vector<8x48xf32>
    %cst_30 = arith.constant dense<0.000000e+00> : vector<8x48xf32>
    %160 = tpu.matmul %158, %0, %cst_30 {dimension_numbers = #tpu.dot_dimension_numbers<[1], [0], [0], [1], [0, 0, 1, 1], [], []>} : vector<8x16xf32>, vector<16x48xf32>, vector<8x48xf32> -> vector<8x48xf32>
    %161 = vector.extract_strided_slice %159 {offsets = [0, 0], sizes = [8, 16], strides = [1, 1]} : vector<8x48xf32> to vector<8x16xf32>
    %162 = vector.extract_strided_slice %160 {offsets = [0, 0], sizes = [8, 16], strides = [1, 1]} : vector<8x48xf32> to vector<8x16xf32>
    %163 = arith.addf %161, %162 : vector<8x16xf32>
    %164 = arith.negf %163 : vector<8x16xf32>
    %165 = math.exp %164 : vector<8x16xf32>
    %cst_31 = arith.constant 1.000000e+00 : f32
    %166 = vector.broadcast %cst_31 : f32 to vector<8x16xf32>
    %167 = arith.addf %166, %165 : vector<8x16xf32>
    %168 = arith.divf %166, %167 : vector<8x16xf32>
    %169 = vector.extract_strided_slice %159 {offsets = [0, 16], sizes = [8, 16], strides = [1, 1]} : vector<8x48xf32> to vector<8x16xf32>
    %170 = vector.extract_strided_slice %160 {offsets = [0, 16], sizes = [8, 16], strides = [1, 1]} : vector<8x48xf32> to vector<8x16xf32>
    %171 = arith.addf %169, %170 : vector<8x16xf32>
    %172 = arith.negf %171 : vector<8x16xf32>
    %173 = math.exp %172 : vector<8x16xf32>
    %cst_32 = arith.constant 1.000000e+00 : f32
    %174 = vector.broadcast %cst_32 : f32 to vector<8x16xf32>
    %175 = arith.addf %174, %173 : vector<8x16xf32>
    %176 = arith.divf %174, %175 : vector<8x16xf32>
    %177 = vector.extract_strided_slice %159 {offsets = [0, 32], sizes = [8, 16], strides = [1, 1]} : vector<8x48xf32> to vector<8x16xf32>
    %178 = vector.extract_strided_slice %160 {offsets = [0, 32], sizes = [8, 16], strides = [1, 1]} : vector<8x48xf32> to vector<8x16xf32>
    %179 = vector.broadcast %1 : vector<1x16xf32> to vector<8x16xf32>
    %180 = arith.addf %178, %179 : vector<8x16xf32>
    %181 = arith.mulf %168, %180 : vector<8x16xf32>
    %182 = arith.addf %177, %181 : vector<8x16xf32>
    %183 = math.tanh %182 : vector<8x16xf32>
    %cst_33 = arith.constant 1.000000e+00 : f32
    %184 = vector.broadcast %cst_33 : f32 to vector<8x16xf32>
    %185 = arith.subf %184, %176 : vector<8x16xf32>
    %186 = arith.mulf %185, %183 : vector<8x16xf32>
    %187 = arith.mulf %176, %158 : vector<8x16xf32>
    %188 = arith.addf %186, %187 : vector<8x16xf32>
    %189 = vector.extract_strided_slice %7 {offsets = [48, 0], sizes = [8, 48], strides = [1, 1]} : vector<64x48xf32> to vector<8x48xf32>
    %cst_34 = arith.constant dense<0.000000e+00> : vector<8x48xf32>
    %190 = tpu.matmul %188, %0, %cst_34 {dimension_numbers = #tpu.dot_dimension_numbers<[1], [0], [0], [1], [0, 0, 1, 1], [], []>} : vector<8x16xf32>, vector<16x48xf32>, vector<8x48xf32> -> vector<8x48xf32>
    %191 = vector.extract_strided_slice %189 {offsets = [0, 0], sizes = [8, 16], strides = [1, 1]} : vector<8x48xf32> to vector<8x16xf32>
    %192 = vector.extract_strided_slice %190 {offsets = [0, 0], sizes = [8, 16], strides = [1, 1]} : vector<8x48xf32> to vector<8x16xf32>
    %193 = arith.addf %191, %192 : vector<8x16xf32>
    %194 = arith.negf %193 : vector<8x16xf32>
    %195 = math.exp %194 : vector<8x16xf32>
    %cst_35 = arith.constant 1.000000e+00 : f32
    %196 = vector.broadcast %cst_35 : f32 to vector<8x16xf32>
    %197 = arith.addf %196, %195 : vector<8x16xf32>
    %198 = arith.divf %196, %197 : vector<8x16xf32>
    %199 = vector.extract_strided_slice %189 {offsets = [0, 16], sizes = [8, 16], strides = [1, 1]} : vector<8x48xf32> to vector<8x16xf32>
    %200 = vector.extract_strided_slice %190 {offsets = [0, 16], sizes = [8, 16], strides = [1, 1]} : vector<8x48xf32> to vector<8x16xf32>
    %201 = arith.addf %199, %200 : vector<8x16xf32>
    %202 = arith.negf %201 : vector<8x16xf32>
    %203 = math.exp %202 : vector<8x16xf32>
    %cst_36 = arith.constant 1.000000e+00 : f32
    %204 = vector.broadcast %cst_36 : f32 to vector<8x16xf32>
    %205 = arith.addf %204, %203 : vector<8x16xf32>
    %206 = arith.divf %204, %205 : vector<8x16xf32>
    %207 = vector.extract_strided_slice %189 {offsets = [0, 32], sizes = [8, 16], strides = [1, 1]} : vector<8x48xf32> to vector<8x16xf32>
    %208 = vector.extract_strided_slice %190 {offsets = [0, 32], sizes = [8, 16], strides = [1, 1]} : vector<8x48xf32> to vector<8x16xf32>
    %209 = vector.broadcast %1 : vector<1x16xf32> to vector<8x16xf32>
    %210 = arith.addf %208, %209 : vector<8x16xf32>
    %211 = arith.mulf %198, %210 : vector<8x16xf32>
    %212 = arith.addf %207, %211 : vector<8x16xf32>
    %213 = math.tanh %212 : vector<8x16xf32>
    %cst_37 = arith.constant 1.000000e+00 : f32
    %214 = vector.broadcast %cst_37 : f32 to vector<8x16xf32>
    %215 = arith.subf %214, %206 : vector<8x16xf32>
    %216 = arith.mulf %215, %213 : vector<8x16xf32>
    %217 = arith.mulf %206, %188 : vector<8x16xf32>
    %218 = arith.addf %216, %217 : vector<8x16xf32>
    %219 = vector.extract_strided_slice %7 {offsets = [56, 0], sizes = [8, 48], strides = [1, 1]} : vector<64x48xf32> to vector<8x48xf32>
    %cst_38 = arith.constant dense<0.000000e+00> : vector<8x48xf32>
    %220 = tpu.matmul %218, %0, %cst_38 {dimension_numbers = #tpu.dot_dimension_numbers<[1], [0], [0], [1], [0, 0, 1, 1], [], []>} : vector<8x16xf32>, vector<16x48xf32>, vector<8x48xf32> -> vector<8x48xf32>
    %221 = vector.extract_strided_slice %219 {offsets = [0, 0], sizes = [8, 16], strides = [1, 1]} : vector<8x48xf32> to vector<8x16xf32>
    %222 = vector.extract_strided_slice %220 {offsets = [0, 0], sizes = [8, 16], strides = [1, 1]} : vector<8x48xf32> to vector<8x16xf32>
    %223 = arith.addf %221, %222 : vector<8x16xf32>
    %224 = arith.negf %223 : vector<8x16xf32>
    %225 = math.exp %224 : vector<8x16xf32>
    %cst_39 = arith.constant 1.000000e+00 : f32
    %226 = vector.broadcast %cst_39 : f32 to vector<8x16xf32>
    %227 = arith.addf %226, %225 : vector<8x16xf32>
    %228 = arith.divf %226, %227 : vector<8x16xf32>
    %229 = vector.extract_strided_slice %219 {offsets = [0, 16], sizes = [8, 16], strides = [1, 1]} : vector<8x48xf32> to vector<8x16xf32>
    %230 = vector.extract_strided_slice %220 {offsets = [0, 16], sizes = [8, 16], strides = [1, 1]} : vector<8x48xf32> to vector<8x16xf32>
    %231 = arith.addf %229, %230 : vector<8x16xf32>
    %232 = arith.negf %231 : vector<8x16xf32>
    %233 = math.exp %232 : vector<8x16xf32>
    %cst_40 = arith.constant 1.000000e+00 : f32
    %234 = vector.broadcast %cst_40 : f32 to vector<8x16xf32>
    %235 = arith.addf %234, %233 : vector<8x16xf32>
    %236 = arith.divf %234, %235 : vector<8x16xf32>
    %237 = vector.extract_strided_slice %219 {offsets = [0, 32], sizes = [8, 16], strides = [1, 1]} : vector<8x48xf32> to vector<8x16xf32>
    %238 = vector.extract_strided_slice %220 {offsets = [0, 32], sizes = [8, 16], strides = [1, 1]} : vector<8x48xf32> to vector<8x16xf32>
    %239 = vector.broadcast %1 : vector<1x16xf32> to vector<8x16xf32>
    %240 = arith.addf %238, %239 : vector<8x16xf32>
    %241 = arith.mulf %228, %240 : vector<8x16xf32>
    %242 = arith.addf %237, %241 : vector<8x16xf32>
    %243 = math.tanh %242 : vector<8x16xf32>
    %cst_41 = arith.constant 1.000000e+00 : f32
    %244 = vector.broadcast %cst_41 : f32 to vector<8x16xf32>
    %245 = arith.subf %244, %236 : vector<8x16xf32>
    %246 = arith.mulf %245, %243 : vector<8x16xf32>
    %247 = arith.mulf %236, %218 : vector<8x16xf32>
    %248 = arith.addf %246, %247 : vector<8x16xf32>
    %c0_42 = arith.constant 0 : index
    %c0_43 = arith.constant 0 : index
    %249 = vector.load %arg1[%c0_42, %c0_43] : memref<8x5xf32, #tpu.memory_space<vmem>>, vector<8x5xf32>
    %c0_44 = arith.constant 0 : index
    %c0_45 = arith.constant 0 : index
    %250 = vector.load %arg6[%c0_44, %c0_45] : memref<5x4xf32, #tpu.memory_space<vmem>>, vector<5x4xf32>
    %cst_46 = arith.constant dense<0.000000e+00> : vector<8x4xf32>
    %251 = tpu.matmul %249, %250, %cst_46 {dimension_numbers = #tpu.dot_dimension_numbers<[1], [0], [0], [1], [0, 0, 1, 1], [], []>} : vector<8x5xf32>, vector<5x4xf32>, vector<8x4xf32> -> vector<8x4xf32>
    %c0_47 = arith.constant 0 : index
    %c0_48 = arith.constant 0 : index
    %252 = vector.load %arg7[%c0_47, %c0_48] : memref<1x4xf32, #tpu.memory_space<vmem>>, vector<1x4xf32>
    %253 = vector.broadcast %252 : vector<1x4xf32> to vector<8x4xf32>
    %254 = arith.addf %251, %253 : vector<8x4xf32>
    %cst_49 = arith.constant 0.000000e+00 : f32
    %255 = vector.broadcast %cst_49 : f32 to vector<8x4xf32>
    %256 = arith.maximumf %254, %255 : vector<8x4xf32>
    %c0_50 = arith.constant 0 : index
    %c0_51 = arith.constant 0 : index
    %257 = vector.load %arg8[%c0_50, %c0_51] : memref<4x4xf32, #tpu.memory_space<vmem>>, vector<4x4xf32>
    %cst_52 = arith.constant dense<0.000000e+00> : vector<8x4xf32>
    %258 = tpu.matmul %256, %257, %cst_52 {dimension_numbers = #tpu.dot_dimension_numbers<[1], [0], [0], [1], [0, 0, 1, 1], [], []>} : vector<8x4xf32>, vector<4x4xf32>, vector<8x4xf32> -> vector<8x4xf32>
    %c0_53 = arith.constant 0 : index
    %c0_54 = arith.constant 0 : index
    %259 = vector.load %arg9[%c0_53, %c0_54] : memref<16x4xf32, #tpu.memory_space<vmem>>, vector<16x4xf32>
    %cst_55 = arith.constant dense<0.000000e+00> : vector<8x4xf32>
    %260 = tpu.matmul %248, %259, %cst_55 {dimension_numbers = #tpu.dot_dimension_numbers<[1], [0], [0], [1], [0, 0, 1, 1], [], []>} : vector<8x16xf32>, vector<16x4xf32>, vector<8x4xf32> -> vector<8x4xf32>
    %261 = arith.addf %258, %260 : vector<8x4xf32>
    %c0_56 = arith.constant 0 : index
    %c0_57 = arith.constant 0 : index
    %262 = vector.load %arg10[%c0_56, %c0_57] : memref<1x4xf32, #tpu.memory_space<vmem>>, vector<1x4xf32>
    %263 = vector.broadcast %262 : vector<1x4xf32> to vector<8x4xf32>
    %264 = arith.addf %261, %263 : vector<8x4xf32>
    %cst_58 = arith.constant 0.000000e+00 : f32
    %265 = vector.broadcast %cst_58 : f32 to vector<8x4xf32>
    %266 = arith.maximumf %264, %265 : vector<8x4xf32>
    %c0_59 = arith.constant 0 : index
    %c0_60 = arith.constant 0 : index
    %267 = vector.load %arg11[%c0_59, %c0_60] : memref<4x1xf32, #tpu.memory_space<vmem>>, vector<4x1xf32>
    %cst_61 = arith.constant dense<0.000000e+00> : vector<8x1xf32>
    %268 = tpu.matmul %266, %267, %cst_61 {dimension_numbers = #tpu.dot_dimension_numbers<[1], [0], [0], [1], [0, 0, 1, 1], [], []>} : vector<8x4xf32>, vector<4x1xf32>, vector<8x1xf32> -> vector<8x1xf32>
    %c0_62 = arith.constant 0 : index
    %c0_63 = arith.constant 0 : index
    %269 = vector.load %arg12[%c0_62, %c0_63] : memref<1x1xf32, #tpu.memory_space<vmem>>, vector<1x1xf32>
    %270 = vector.broadcast %269 : vector<1x1xf32> to vector<8x1xf32>
    %271 = arith.addf %268, %270 : vector<8x1xf32>
    %272 = math.tanh %271 : vector<8x1xf32>
    %c0_64 = arith.constant 0 : index
    %c0_65 = arith.constant 0 : index
    %273 = vector.load %arg13[%c0_64, %c0_65] : memref<8x1xf32, #tpu.memory_space<vmem>>, vector<8x1xf32>
    tpu.vector_store %arg13[%c0_64, %c0_65], %272 {strides = array<i32>} : memref<8x1xf32, #tpu.memory_space<vmem>>, vector<8x1xf32>,
    return
  }
}

</mosaic_0001>

<bundles_post_ra>
// kernel: tpu_custom_call.1
= control target key start
LH: loop header
LB: loop body
LE: loop exit
PB: predicated region body
PF: predicated region fallthrough
CT: control target
= control target key end

     0   :  { %vm90_vm0 = vcmask 1045504   ;;  %vm65_vm1 = vcmask 48128   ;;  %v1591_v0 = vmov 0.0   ;;  %vm1592_vm2 = vmmov 0   ;;  %s1593_s19 = smov 32   ;;  %s1882_s2 = inlined_call_operand.vmem [shape: f32[6,48], index: 2, kind: input, shape index: {}]   ;;  %s1883_s3 = inlined_call_operand.vmem [shape: f32[16,48], index: 3, kind: input, shape index: {}]   ;;  %s1884_s0 = inlined_call_operand.vmem [shape: f32[64,6], index: 0, kind: input, shape index: {}]   ;;  %s1885_s5 = inlined_call_operand.vmem [shape: f32[1,16], index: 5, kind: input, shape index: {}]   ;;  %s1886_s4 = inlined_call_operand.vmem [shape: f32[1,48], index: 4, kind: input, shape index: {}]   ;;  %s1887_s6 = inlined_call_operand.vmem [shape: f32[5,4], index: 6, kind: input, shape index: {}]   ;;  %s1888_s1 = inlined_call_operand.vmem [shape: f32[8,5], index: 1, kind: input, shape index: {}]   ;;  %s1889_s9 = inlined_call_operand.vmem [shape: f32[16,4], index: 9, kind: input, shape index: {}]   ;;  %s1890_s8 = inlined_call_operand.vmem [shape: f32[4,4], index: 8, kind: input, shape index: {}]   ;;  %s1891_s7 = inlined_call_operand.vmem [shape: f32[1,4], index: 7, kind: input, shape index: {}]   ;;  %s1892_s11 = inlined_call_operand.vmem [shape: f32[4,1], index: 11, kind: input, shape index: {}]   ;;  %s1893_s12 = inlined_call_operand.<no memory space> [shape: f32[1,1], index: 12, kind: input, shape index: {}]   ;;  %s1894_s10 = inlined_call_operand.vmem [shape: f32[1,4], index: 10, kind: input, shape index: {}]   ;;  %s1895_s13 = inlined_call_operand.vmem [shape: f32[8,1], index: 13, kind: output, shape index: {}]  }
   0x1   :  { %1458 = vmatprep.subr.mxu1 %v1591_v0  ;;  %v57_v1 = vld [vmem:[%s1882_s2] sm:$0x3f]  ;;  %v1673_v2 = vld [vmem:[%s1883_s3 + $0x8] sm:$0xff]  ;;  %1462 = vmatprep.mubr.msk.f32.mxu1 %vm1592_vm2, %v1591_v0  ;;  %vm199_vm3 = vcmask 130048   ;;  %v51_v44 = vld [vmem:[%s1884_s0 + $0x10] sm:$0xff]  ;;  %vm1035_vm4 = vcmask 1044480  }
   0x2   :  { %v49_v3 = vld [vmem:[%s1884_s0] sm:$0xff]  ;;  %1444 = vmatprep.subr.msk.mxu0 %vm90_vm0, %v57_v1  ;;  %1459 = vmatpush3.msra.mxu1 %v1673_v2  ;;  %v50_v4 = vld [vmem:[%s1884_s0 + $0x8] sm:$0xff]  ;;  %v52_v45 = vld [vmem:[%s1884_s0 + $0x18] sm:$0xff]  ;;  %vm1031_vm5 = vcmask 39936   ;;  %vm1192_vm6 = vcmask 1043456   ;;  %vm1188_vm7 = vcmask 31744  }
   0x3   :  { %v1688_v5 = vld [vmem:[%s1883_s3] sm:$0xff]  ;;  %1445 = vmatpush3.msk.msra.mxu0 %vm90_vm0, %v57_v1  ;;  %1446 = vmatprep.mubr.msk.f32.mxu0 %vm65_vm1, %v49_v3  ;;  %s1594_s3 = smov 96   ;;  %vm1360_vm8 = vcmask 7168  }
   0x4   :  { %v1377_v6 = vld [vmem:[%s1885_s5] ss:$0 sm:$0xff]  ;;  %1460 = vmatprep.subr.mxu1 %v1591_v0  ;;  %1447 = vmatmul.mubr.msk.f32.vlgmr.msra.gmra.mxu0 %vm65_vm1, %v50_v4 }
   0x5   :  { %1461 = vmatpush3.msra.mxu1 %v1688_v5  ;;  %285 = vrot.lane.b32.xlu0 %v1377_v6, %s1593_s19  ;;  %v1719_v12 = vld [vmem:[%s1886_s4] ss:$0 sm:$0xff]  ;;  %s1595_s4 = smov 112  }
   0x6   :  { %1463 = vmatmul.mubr.f32.vlgmr.msra.gmra.mxu1 %v1591_v0  ;;  %1465 = vmatprep.subr.mxu1 %v1591_v0 }
   0x7   :  { %1466 = vmatpush3.msra.mxu1 %v1673_v2  ;;  %1469 = vmatprep.mubr.msk.f32.mxu1 %vm1592_vm2, %v1591_v0 }
   0x8   :  { %1467 = vmatprep.subr.mxu1 %v1591_v0  ;;  %1486 = vmatprep.subr.mxu0 %v1591_v0 }
   0x9   :  { %1468 = vmatpush3.msra.mxu1 %v1688_v5  ;;  %1487 = vmatpush3.msra.mxu0 %v1673_v2 }
   0xa   :  { %1472 = vmatprep.subr.mxu1 %v1591_v0  ;;  %1488 = vmatprep.subr.mxu0 %v1591_v0 }
   0xb   :  { %1489 = vmatpush3.msra.mxu0 %v1688_v5  ;;  %1449 = vmatprep.mubr.msk.f32.mxu0 %vm65_vm1, %v51_v44 }
   0xc   :  { %1500 = vmatprep.subr.mxu0 %v1591_v0  ;;  %1450 = vmatmul.mubr.msk.f32.gmra.mxu0 %vm65_vm1, %v52_v45 }
  0x77   :  { %v1712_v7 = vpop.permute.xlu0 %285 }
  0xc4   :  { %v1448_v11 = vpop.f32.mrf.mxu0 }
  0xc5   :  { %v166_v34 = vadd.f32 %v1448_v11, %v1719_v12 }
  0xc6   :  { %v269_v8 = vpop.f32.mrf.mxu1  ;;  %v160_v13 = vpop.f32.mrf.mxu0 }
  0xc7   :  { %v288_v9 = vadd.f32 %v1712_v7, %v269_v8  ;;  %v161_v14 = vadd.f32 %v1719_v12, %v160_v13 }
  0xc8   :  { %v1464_v10 = vpop.f32.mrf.mxu1 }
  0xc9   :  { %290 = vrot.lane.b32.xlu0 %v288_v9, %s1594_s3  ;;  %v273_v15 = vadd.f32 %v269_v8, %v161_v14 }
  0xcb   :  { %v1376_v16 = vmul.f32 -1.442695, %v273_v15 }
  0xcc   :  { %v1451_v56 = vpop.f32.mrf.mxu0 }
  0xcd   :  { %1541 = vpow2.f32 %v1376_v16 }
  0xce   :  { %v170_v57 = vpop.f32.mrf.mxu0 }
  0xcf   :  { %v171_v58 = vadd.f32 %v1719_v12, %v170_v57 }
  0xda   :  { %v1542_v17 = vpop.eup %1541 }
  0xdb   :  { %v277_v18 = vadd.f32 1.0, %v1542_v17 }
  0xdd   :  { %1543 = vrcp.f32 %v277_v18 }
  0xea   :  { %v1544_v19 = vpop.eup %1543 }
  0xeb   :  { %v300_v25 = vsub.f32 1.0, %v1544_v19  ;;  %v306_v27 = vmul.f32 0.0, %v1544_v19 }
 0x13b   :  { %v291_v20 = vpop.permute.xlu0 %290 }
 0x13c   :  { %v293_v21 = vmul.f32 %v1544_v19, %v291_v20  ;;  %v176_v19 = vadd.f32 %v1451_v56, %v1719_v12 }
 0x13e   :  { %295 = vrot.lane.b32.xlu1 %v293_v21, %s1593_s19 }
 0x1b0   :  { %v296_v22 = vpop.permute.xlu1 %295 }
 0x1b1   :  { %v298_v23 = vadd.f32 %v296_v22, %v161_v14 }
 0x1b3   :  { %1545 = vtanh.f32 %v298_v23 }
 0x1c0   :  { %v1546_v24 = vpop.eup %1545 }
 0x1c1   :  { %302 = vrot.lane.b32.xlu1 %v1546_v24, %s1595_s4 }
 0x233   :  { %v303_v26 = vpop.permute.xlu1 %302 }
 0x234   :  { %v305_v28 = vmul.f32 %v303_v26, %v300_v25 }
 0x236   :  { %v307_v29 = vadd.f32 %v306_v27, %v305_v28 }
 0x238   :  { %309 = vrot.lane.b32.xlu0 %v307_v29, %s1595_s4 }
 0x2aa   :  { %v310_v30 = vpop.permute.xlu0 %309 }
 0x2ab   :  { %1470 = vmatmul.mubr.msk.f32.vlgmr.msra.gmra.mxu1 %vm199_vm3, %v310_v30  ;;  %v54_v30 = vld [vmem:[%s1884_s0 + $0x28] sm:$0xff] }
 0x2ac   :  { %1473 = vmatpush3.msra.mxu1 %v1673_v2  ;;  %1476 = vmatprep.mubr.msk.f32.mxu1 %vm1592_vm2, %v1591_v0 }
 0x2ad   :  { %1474 = vmatprep.subr.mxu1 %v1591_v0 }
 0x2ae   :  { %1475 = vmatpush3.msra.mxu1 %v1688_v5 }
 0x2af   :  { %1479 = vmatprep.subr.mxu1 %v1591_v0 }
 0x36b   :  { %v379_v31 = vpop.f32.mrf.mxu1 }
 0x36c   :  { %v390_v32 = vadd.f32 %v379_v31, %v1712_v7  ;;  %v383_v35 = vadd.f32 %v379_v31, %v166_v34  ;;  %v55_v31 = vld [vmem:[%s1884_s0 + $0x30] sm:$0xff] }
 0x36d   :  { %v1471_v33 = vpop.f32.mrf.mxu1 }
 0x36e   :  { %392 = vrot.lane.b32.xlu1 %v390_v32, %s1594_s3  ;;  %v1379_v36 = vmul.f32 -1.442695, %v383_v35  ;;  %v56_v32 = vld [vmem:[%s1884_s0 + $0x38] sm:$0xff] }
 0x370   :  { %1547 = vpow2.f32 %v1379_v36 }
 0x37d   :  { %v1548_v37 = vpop.eup %1547 }
 0x37e   :  { %v387_v38 = vadd.f32 1.0, %v1548_v37 }
 0x380   :  { %1549 = vrcp.f32 %v387_v38 }
 0x38d   :  { %v1550_v39 = vpop.eup %1549 }
 0x38e   :  { %v402_v47 = vsub.f32 1.0, %v1550_v39  ;;  %v408_v49 = vmul.f32 %v1550_v39, %v307_v29  ;;  %v53_v29 = vld [vmem:[%s1884_s0 + $0x20] sm:$0xff] }
 0x38f   :  { %1452 = vmatprep.mubr.msk.f32.mxu0 %vm65_vm1, %v53_v29 }
 0x390   :  { %1453 = vmatmul.mubr.msk.f32.gmra.mxu0 %vm65_vm1, %v54_v30 }
 0x391   :  { %1455 = vmatprep.mubr.msk.f32.mxu0 %vm65_vm1, %v55_v31 }
 0x394   :  { %1456 = vmatmul.mubr.msk.f32.gmra.mxu0 %vm65_vm1, %v56_v32 }
 0x395   :  { %1490 = vmatprep.mubr.msk.f32.mxu0 %vm1592_vm2, %v1591_v0 }
 0x3e0   :  { %v393_v40 = vpop.permute.xlu1 %392 }
 0x3e1   :  { %v395_v41 = vmul.f32 %v1550_v39, %v393_v40 }
 0x3e3   :  { %397 = vrot.lane.b32.xlu0 %v395_v41, %s1593_s19 }
 0x450   :  { %v1454_v40 = vpop.f32.mrf.mxu0 }
 0x452   :  { %v180_v41 = vpop.f32.mrf.mxu0 }
 0x455   :  { %v398_v42 = vpop.permute.xlu0 %397 }
 0x456   :  { %v400_v43 = vadd.f32 %v398_v42, %v166_v34  ;;  %v1797_v42 = vpop.f32.mrf.mxu0 }
 0x458   :  { %1551 = vtanh.f32 %v400_v43  ;;  %v1799_v43 = vpop.f32.mrf.mxu0 }
 0x465   :  { %v1552_v46 = vpop.eup %1551 }
 0x466   :  { %404 = vrot.lane.b32.xlu1 %v1552_v46, %s1595_s4 }
 0x4d8   :  { %v405_v48 = vpop.permute.xlu1 %404 }
 0x4d9   :  { %v407_v50 = vmul.f32 %v405_v48, %v402_v47  ;;  %v181_v47 = vadd.f32 %v1719_v12, %v180_v41 }
 0x4db   :  { %v409_v51 = vadd.f32 %v408_v49, %v407_v50 }
 0x4dd   :  { %411 = vrot.lane.b32.xlu0 %v409_v51, %s1595_s4 }
 0x54f   :  { %v412_v52 = vpop.permute.xlu0 %411 }
 0x550   :  { %1477 = vmatmul.mubr.msk.f32.vlgmr.msra.gmra.mxu1 %vm199_vm3, %v412_v52 }
 0x551   :  { %1480 = vmatpush3.msra.mxu1 %v1673_v2  ;;  %1483 = vmatprep.mubr.msk.f32.mxu1 %vm1592_vm2, %v1591_v0 }
 0x552   :  { %1481 = vmatprep.subr.mxu1 %v1591_v0 }
 0x553   :  { %1482 = vmatpush3.msra.mxu1 %v1688_v5 }
 0x554   :  { %1493 = vmatprep.subr.mxu1 %v1591_v0 }
 0x610   :  { %v481_v53 = vpop.f32.mrf.mxu1 }
 0x611   :  { %v492_v54 = vadd.f32 %v481_v53, %v1712_v7  ;;  %v485_v59 = vadd.f32 %v481_v53, %v171_v58 }
 0x612   :  { %v1478_v55 = vpop.f32.mrf.mxu1 }
 0x613   :  { %494 = vrot.lane.b32.xlu1 %v492_v54, %s1594_s3  ;;  %v1381_v60 = vmul.f32 -1.442695, %v485_v59 }
 0x615   :  { %1553 = vpow2.f32 %v1381_v60 }
 0x622   :  { %v1554_v61 = vpop.eup %1553 }
 0x623   :  { %v489_v62 = vadd.f32 1.0, %v1554_v61 }
 0x625   :  { %1555 = vrcp.f32 %v489_v62 }
 0x632   :  { %v1556_v63 = vpop.eup %1555 }
 0x633   :  { %v504_v9 = vsub.f32 1.0, %v1556_v63  ;;  %v510_v11 = vmul.f32 %v1556_v63, %v409_v51 }
 0x685   :  { %v495_v1 = vpop.permute.xlu1 %494 }
 0x686   :  { %v497_v3 = vmul.f32 %v1556_v63, %v495_v1 }
 0x688   :  { %499 = vrot.lane.b32.xlu0 %v497_v3, %s1593_s19 }
 0x6fa   :  { %v500_v4 = vpop.permute.xlu0 %499 }
 0x6fb   :  { %v502_v6 = vadd.f32 %v500_v4, %v171_v58 }
 0x6fd   :  { %1557 = vtanh.f32 %v502_v6  ;;  %v186_v6 = vadd.f32 %v1454_v40, %v1719_v12 }
 0x70a   :  { %v1558_v8 = vpop.eup %1557 }
 0x70b   :  { %506 = vrot.lane.b32.xlu1 %v1558_v8, %s1595_s4 }
 0x77d   :  { %v507_v10 = vpop.permute.xlu1 %506 }
 0x77e   :  { %v509_v13 = vmul.f32 %v507_v10, %v504_v9 }
 0x780   :  { %v511_v14 = vadd.f32 %v510_v11, %v509_v13 }
 0x782   :  { %513 = vrot.lane.b32.xlu0 %v511_v14, %s1595_s4 }
 0x7f4   :  { %v514_v15 = vpop.permute.xlu0 %513 }
 0x7f5   :  { %1484 = vmatmul.mubr.msk.f32.vlgmr.msra.gmra.mxu1 %vm199_vm3, %v514_v15 }
 0x7f6   :  { %1494 = vmatpush3.msra.mxu1 %v1673_v2  ;;  %1497 = vmatprep.mubr.msk.f32.mxu1 %vm1592_vm2, %v1591_v0 }
 0x7f7   :  { %1495 = vmatprep.subr.mxu1 %v1591_v0 }
 0x7f8   :  { %1496 = vmatpush3.msra.mxu1 %v1688_v5 }
 0x7f9   :  { %1507 = vmatprep.subr.mxu1 %v1591_v0 }
 0x8b5   :  { %v583_v16 = vpop.f32.mrf.mxu1 }
 0x8b6   :  { %v594_v17 = vadd.f32 %v583_v16, %v1712_v7  ;;  %v587_v20 = vadd.f32 %v583_v16, %v176_v19 }
 0x8b7   :  { %v1485_v18 = vpop.f32.mrf.mxu1 }
 0x8b8   :  { %596 = vrot.lane.b32.xlu1 %v594_v17, %s1594_s3  ;;  %v1383_v21 = vmul.f32 -1.442695, %v587_v20 }
 0x8ba   :  { %1559 = vpow2.f32 %v1383_v21 }
 0x8c7   :  { %v1560_v22 = vpop.eup %1559 }
 0x8c8   :  { %v591_v23 = vadd.f32 1.0, %v1560_v22 }
 0x8ca   :  { %1561 = vrcp.f32 %v591_v23 }
 0x8d7   :  { %v1562_v24 = vpop.eup %1561 }
 0x8d8   :  { %v606_v34 = vsub.f32 1.0, %v1562_v24  ;;  %v612_v36 = vmul.f32 %v1562_v24, %v511_v14 }
 0x92a   :  { %v597_v25 = vpop.permute.xlu1 %596 }
 0x92b   :  { %v599_v26 = vmul.f32 %v1562_v24, %v597_v25 }
 0x92d   :  { %601 = vrot.lane.b32.xlu0 %v599_v26, %s1593_s19  ;;  %v191_v26 = vadd.f32 %v1719_v12, %v1799_v43 }
 0x99f   :  { %v602_v27 = vpop.permute.xlu0 %601 }
 0x9a0   :  { %v604_v28 = vadd.f32 %v602_v27, %v176_v19 }
 0x9a2   :  { %1563 = vtanh.f32 %v604_v28 }
 0x9af   :  { %v1564_v33 = vpop.eup %1563 }
 0x9b0   :  { %608 = vrot.lane.b32.xlu1 %v1564_v33, %s1595_s4 }
 0xa22   :  { %v609_v35 = vpop.permute.xlu1 %608 }
 0xa23   :  { %v611_v37 = vmul.f32 %v609_v35, %v606_v34 }
 0xa25   :  { %v613_v38 = vadd.f32 %v612_v36, %v611_v37 }
 0xa27   :  { %615 = vrot.lane.b32.xlu0 %v613_v38, %s1595_s4 }
 0xa99   :  { %v616_v39 = vpop.permute.xlu0 %615 }
 0xa9a   :  { %1491 = vmatmul.mubr.msk.f32.vlgmr.msra.gmra.mxu0 %vm199_vm3, %v616_v39 }
 0xa9b   :  { %1501 = vmatpush3.msra.mxu0 %v1673_v2  ;;  %1504 = vmatprep.mubr.msk.f32.mxu0 %vm1592_vm2, %v1591_v0 }
 0xa9c   :  { %1502 = vmatprep.subr.mxu0 %v1591_v0 }
 0xa9d   :  { %1503 = vmatpush3.msra.mxu0 %v1688_v5 }
 0xa9e   :  { %1514 = vmatprep.subr.mxu0 %v1591_v0 }
 0xb5a   :  { %v685_v44 = vpop.f32.mrf.mxu0 }
 0xb5b   :  { %v696_v45 = vadd.f32 %v685_v44, %v1712_v7  ;;  %v689_v48 = vadd.f32 %v685_v44, %v181_v47 }
 0xb5c   :  { %v1492_v46 = vpop.f32.mrf.mxu0 }
 0xb5d   :  { %698 = vrot.lane.b32.xlu1 %v696_v45, %s1594_s3  ;;  %v1385_v49 = vmul.f32 -1.442695, %v689_v48 }
 0xb5f   :  { %1565 = vpow2.f32 %v1385_v49 }
 0xb6c   :  { %v1566_v50 = vpop.eup %1565 }
 0xb6d   :  { %v693_v51 = vadd.f32 1.0, %v1566_v50 }
 0xb6f   :  { %1567 = vrcp.f32 %v693_v51 }
 0xb7c   :  { %v1568_v52 = vpop.eup %1567 }
 0xb7d   :  { %v708_v58 = vsub.f32 1.0, %v1568_v52  ;;  %v714_v60 = vmul.f32 %v1568_v52, %v613_v38 }
 0xbcf   :  { %v699_v53 = vpop.permute.xlu1 %698 }
 0xbd0   :  { %v701_v54 = vmul.f32 %v1568_v52, %v699_v53 }
 0xbd2   :  { %703 = vrot.lane.b32.xlu0 %v701_v54, %s1593_s19 }
 0xc44   :  { %v704_v55 = vpop.permute.xlu0 %703 }
 0xc45   :  { %v706_v56 = vadd.f32 %v704_v55, %v181_v47  ;;  %v196_v47 = vadd.f32 %v1797_v42, %v1719_v12  ;;  %v1022_v12 = vld [vmem:[%s1888_s1] sm:$0xff] }
 0xc47   :  { %1569 = vtanh.f32 %v706_v56  ;;  %v1112_v56 = vld [vmem:[%s1889_s9 + $0x8] sm:$0xff] }
 0xc54   :  { %v1570_v57 = vpop.eup %1569 }
 0xc55   :  { %710 = vrot.lane.b32.xlu1 %v1570_v57, %s1595_s4  ;;  %v1110_v57 = vld [vmem:[%s1890_s8] sm:$0xf] }
 0xcc7   :  { %v711_v59 = vpop.permute.xlu1 %710 }
 0xcc8   :  { %v713_v61 = vmul.f32 %v711_v59, %v708_v58  ;;  %v1111_v58 = vld [vmem:[%s1889_s9] sm:$0xff] }
 0xcca   :  { %v715_v62 = vadd.f32 %v714_v60, %v713_v61  ;;  %v1392_v60 = vld [vmem:[%s1891_s7] ss:$0 sm:$0xff] }
 0xccc   :  { %717 = vrot.lane.b32.xlu0 %v715_v62, %s1595_s4 }
 0xd3e   :  { %v718_v63 = vpop.permute.xlu0 %717 }
 0xd3f   :  { %1498 = vmatmul.mubr.msk.f32.vlgmr.msra.gmra.mxu1 %vm199_vm3, %v718_v63 }
 0xd40   :  { %1508 = vmatpush3.msra.mxu1 %v1673_v2  ;;  %1511 = vmatprep.mubr.msk.f32.mxu1 %vm1592_vm2, %v1591_v0 }
 0xd41   :  { %1509 = vmatprep.subr.mxu1 %v1591_v0 }
 0xd42   :  { %1510 = vmatpush3.msra.mxu1 %v1688_v5 }
 0xd43   :  { %1519 = vmatprep.subr.mxu1 %v1591_v0 }
 0xdff   :  { %v787_v1 = vpop.f32.mrf.mxu1 }
 0xe00   :  { %v798_v3 = vadd.f32 %v787_v1, %v1712_v7  ;;  %v791_v8 = vadd.f32 %v787_v1, %v186_v6 }
 0xe01   :  { %v1499_v4 = vpop.f32.mrf.mxu1 }
 0xe02   :  { %800 = vrot.lane.b32.xlu1 %v798_v3, %s1594_s3  ;;  %v1387_v9 = vmul.f32 -1.442695, %v791_v8 }
 0xe04   :  { %1571 = vpow2.f32 %v1387_v9 }
 0xe11   :  { %v1572_v2 = vpop.eup %1571 }
 0xe12   :  { %v795_v10 = vadd.f32 1.0, %v1572_v2 }
 0xe14   :  { %1573 = vrcp.f32 %v795_v10 }
 0xe21   :  { %v1574_v11 = vpop.eup %1573 }
 0xe22   :  { %v810_v17 = vsub.f32 1.0, %v1574_v11  ;;  %v816_v19 = vmul.f32 %v1574_v11, %v715_v62 }
 0xe74   :  { %v801_v13 = vpop.permute.xlu1 %800 }
 0xe75   :  { %v803_v14 = vmul.f32 %v1574_v11, %v801_v13  ;;  %v1275_v13 = vld [vmem:[%s1892_s11] sm:$0xf] }
 0xe77   :  { %805 = vrot.lane.b32.xlu0 %v803_v14, %s1593_s19  ;;  %v18_v14 = vstv %s1893_s12 }
 0xe78   :  { %19 = vst [vmem:[#allocation2] sm:$0x1] %v18_v14 }
 0xee9   :  { %v806_v5 = vpop.permute.xlu0 %805 }
 0xeea   :  { %v808_v15 = vadd.f32 %v806_v5, %v186_v6 }
 0xeec   :  { %1575 = vtanh.f32 %v808_v15  ;;  %v1398_v15 = vld [vmem:[%s1894_s10] ss:$0 sm:$0xff] }
 0xef9   :  { %v1576_v16 = vpop.eup %1575 }
 0xefa   :  { %812 = vrot.lane.b32.xlu1 %v1576_v16, %s1595_s4 }
 0xf6c   :  { %v813_v18 = vpop.permute.xlu1 %812 }
 0xf6d   :  { %v815_v20 = vmul.f32 %v813_v18, %v810_v17 }
 0xf6f   :  { %v817_v21 = vadd.f32 %v816_v19, %v815_v20  ;;  %v1399_v19 = vld [vmem:[#allocation2] ss:$0 sm:$0xff] }
 0xf71   :  { %819 = vrot.lane.b32.xlu0 %v817_v21, %s1595_s4 }
 0xfe3   :  { %v820_v22 = vpop.permute.xlu0 %819 }
 0xfe4   :  { %1505 = vmatmul.mubr.msk.f32.vlgmr.msra.gmra.mxu0 %vm199_vm3, %v820_v22 }
 0xfe5   :  { %1516 = vmatprep.mubr.msk.f32.mxu0 %vm1592_vm2, %v1591_v0 }
0x10a4   :  { %v889_v23 = vpop.f32.mrf.mxu0 }
0x10a5   :  { %v900_v24 = vadd.f32 %v889_v23, %v1712_v7  ;;  %v893_v27 = vadd.f32 %v889_v23, %v191_v26 }
0x10a6   :  { %v1506_v25 = vpop.f32.mrf.mxu0 }
0x10a7   :  { %902 = vrot.lane.b32.xlu1 %v900_v24, %s1594_s3  ;;  %v1389_v28 = vmul.f32 -1.442695, %v893_v27 }
0x10a9   :  { %1577 = vpow2.f32 %v1389_v28 }
0x10b6   :  { %v1578_v29 = vpop.eup %1577 }
0x10b7   :  { %v897_v30 = vadd.f32 1.0, %v1578_v29 }
0x10b9   :  { %1579 = vrcp.f32 %v897_v30 }
0x10c6   :  { %v1580_v31 = vpop.eup %1579 }
0x10c7   :  { %v912_v37 = vsub.f32 1.0, %v1580_v31  ;;  %v918_v39 = vmul.f32 %v1580_v31, %v817_v21 }
0x1119   :  { %v903_v32 = vpop.permute.xlu1 %902 }
0x111a   :  { %v905_v33 = vmul.f32 %v1580_v31, %v903_v32 }
0x111c   :  { %907 = vrot.lane.b32.xlu0 %v905_v33, %s1593_s19 }
0x118e   :  { %v908_v34 = vpop.permute.xlu0 %907 }
0x118f   :  { %v910_v35 = vadd.f32 %v908_v34, %v191_v26 }
0x1191   :  { %1581 = vtanh.f32 %v910_v35 }
0x119e   :  { %v1582_v36 = vpop.eup %1581 }
0x119f   :  { %914 = vrot.lane.b32.xlu1 %v1582_v36, %s1595_s4 }
0x1211   :  { %v915_v38 = vpop.permute.xlu1 %914 }
0x1212   :  { %v917_v40 = vmul.f32 %v915_v38, %v912_v37 }
0x1214   :  { %v919_v41 = vadd.f32 %v918_v39, %v917_v40 }
0x1216   :  { %921 = vrot.lane.b32.xlu0 %v919_v41, %s1595_s4 }
0x1288   :  { %v922_v43 = vpop.permute.xlu0 %921 }
0x1289   :  { %1512 = vmatmul.mubr.msk.f32.vlgmr.msra.gmra.mxu1 %vm199_vm3, %v922_v43 }
0x128a   :  { %1523 = vmatprep.mubr.msk.f32.mxu1 %vm1592_vm2, %v1591_v0  ;;  %1520 = vmatpush3.msra.mxu1 %v1112_v56 }
0x128b   :  { %1521 = vmatprep.subr.mxu1 %v1591_v0 }
0x128c   :  { %1522 = vmatpush3.msra.mxu1 %v1111_v58 }
0x128d   :  { %1531 = vmatprep.subr.mxu1 %v1591_v0 }
0x1349   :  { %v991_v44 = vpop.f32.mrf.mxu1 }
0x134a   :  { %v1002_v45 = vadd.f32 %v991_v44, %v1712_v7  ;;  %v995_v48 = vadd.f32 %v991_v44, %v196_v47  ;;  %v1023_v7 = vld [vmem:[%s1887_s6] sm:$0x1f] }
0x134b   :  { %v1513_v46 = vpop.f32.mrf.mxu1  ;;  %1515 = vmatpush3.msk.msra.mxu0 %vm1035_vm4, %v1023_v7 }
0x134c   :  { %1004 = vrot.lane.b32.xlu1 %v1002_v45, %s1594_s3  ;;  %v1391_v49 = vmul.f32 -1.442695, %v995_v48  ;;  %1517 = vmatmul.mubr.msk.f32.vlgmr.msra.gmra.mxu0 %vm1031_vm5, %v1022_v12 }
0x134d   :  { %1526 = vmatprep.subr.mxu0 %v1591_v0  ;;  %1528 = vmatprep.mubr.msk.f32.mxu0 %vm1592_vm2, %v1591_v0 }
0x134e   :  { %1583 = vpow2.f32 %v1391_v49  ;;  %1527 = vmatpush3.msk.msra.mxu0 %vm1192_vm6, %v1110_v57 }
0x135b   :  { %v1584_v50 = vpop.eup %1583 }
0x135c   :  { %v999_v51 = vadd.f32 1.0, %v1584_v50 }
0x135e   :  { %1585 = vrcp.f32 %v999_v51 }
0x136b   :  { %v1586_v52 = vpop.eup %1585 }
0x136c   :  { %v1014_v3 = vsub.f32 1.0, %v1586_v52  ;;  %v1020_v6 = vmul.f32 %v1586_v52, %v919_v41 }
0x13be   :  { %v1005_v53 = vpop.permute.xlu1 %1004 }
0x13bf   :  { %v1007_v54 = vmul.f32 %v1586_v52, %v1005_v53 }
0x13c1   :  { %1009 = vrot.lane.b32.xlu0 %v1007_v54, %s1593_s19 }
0x140c   :  { %v1105_v61 = vpop.f32.mrf.mxu0 }
0x140d   :  { %v1106_v62 = vadd.f32 %v1392_v60, %v1105_v61 }
0x140e   :  { %v1518_v63 = vpop.f32.mrf.mxu0 }
0x140f   :  { %v1109_v1 = vmax.f32 %v1106_v62, 0.0 }
0x1411   :  { %1529 = vmatmul.mubr.msk.f32.vlgmr.msra.gmra.mxu0 %vm1188_vm7, %v1109_v1 }
0x1433   :  { %v1010_v42 = vpop.permute.xlu0 %1009 }
0x1434   :  { %v1012_v55 = vadd.f32 %v1010_v42, %v196_v47 }
0x1436   :  { %1587 = vtanh.f32 %v1012_v55 }
0x1443   :  { %v1588_v59 = vpop.eup %1587 }
0x1444   :  { %1016 = vrot.lane.b32.xlu1 %v1588_v59, %s1595_s4 }
0x14b6   :  { %v1017_v4 = vpop.permute.xlu1 %1016 }
0x14b7   :  { %v1019_v8 = vmul.f32 %v1017_v4, %v1014_v3 }
0x14b9   :  { %v1021_v9 = vadd.f32 %v1020_v6, %v1019_v8 }
0x14bb   :  { %1114 = vrot.lane.b32.xlu0 %v1021_v9, %s1595_s4 }
0x14d1   :  { %v1262_v10 = vpop.f32.mrf.mxu0 }
0x14d3   :  { %v1530_v11 = vpop.f32.mrf.mxu0 }
0x152d   :  { %v1115_v2 = vpop.permute.xlu0 %1114 }
0x152e   :  { %1524 = vmatmul.mubr.msk.f32.vlgmr.msra.gmra.mxu1 %vm199_vm3, %v1115_v2 }
0x152f   :  { %1533 = vmatprep.mubr.msk.f32.mxu1 %vm1592_vm2, %v1591_v0  ;;  %1532 = vmatpush3.msk.msra.mxu1 %vm1192_vm6, %v1275_v13 }
0x15ee   :  { %v1184_v5 = vpop.f32.mrf.mxu1 }
0x15ef   :  { %v1263_v16 = vadd.f32 %v1262_v10, %v1184_v5 }
0x15f0   :  { %v1525_v0 = vpop.f32.mrf.mxu1 }
0x15f1   :  { %v1273_v17 = vadd.f32 %v1398_v15, %v1263_v16 }
0x15f3   :  { %v1274_v18 = vmax.f32 %v1273_v17, 0.0 }
0x15f5   :  { %1534 = vmatmul.mubr.msk.f32.vlgmr.msra.gmra.mxu1 %vm1188_vm7, %v1274_v18 }
0x16b5   :  { %v1355_v20 = vpop.f32.mrf.mxu1 }
0x16b6   :  { %v1356_v21 = vadd.f32 %v1399_v19, %v1355_v20 }
0x16b7   :  { %v1535_v22 = vpop.f32.mrf.mxu1 }
0x16b8   :  { %1589 = vtanh.f32 %v1356_v21 }
0x16c5   :  { %v1590_v23 = vpop.eup %1589 }
0x16c6   :  { %1361 = vst.msk [vmem:[%s1895_s13] sm:$0xff] %vm1360_vm8, %v1590_v23 }

</bundles_post_ra>
